<compile_context>
chip_gen: v7x
topology: tpu7x:2x2x1
jax: 0.10.0
libtpu: 0.0.40
codegen_flags: <defaults>
</compile_context>

<pallas_src>
import jax
import jax.numpy as jnp
from jax import lax
from jax.experimental import pallas as pl
from jax.experimental.pallas import tpu as pltpu

B, H, W = 2, 16, 16
CIN, CM, HID = 4, 6, 8
G = 4 * HID            # 32 gate channels
HW = H * W             # 256
NTOT = B * HW          # 512 (lane-dense column dim)
K_LAT = 25 * HID       # 200
K_BU = 9 * CIN         # 36
K_RAW = K_LAT + K_BU   # 236
K_PAD = 256            # pad contraction dim: one full MXU pass, (8,128)-friendly
EPS = 1e-5


def convlstm_kernel(p_ref, w_ref, bias_ref, cx_ref, out_ref):
    # ---- one fused im2col matmul (replaces 25 + 9 per-tap K=8/K=4 dots) ----
    #   (G, K_PAD) @ (K_PAD, B*HW) -> (G, B*HW); bf16 operands, f32 accumulation.
    acc = jnp.dot(w_ref[...], p_ref[...], preferred_element_type=jnp.float32)
    # bias_ref already contains conv_lateral_from_motor(x[1]) + bl + bb + bm.
    acc = acc + bias_ref[...]

    # ---- per-sample LayerNorm over all G*H*W gate values (gamma=1, beta=0) ----
    # ---- + gate nonlinearities + cell update.  B=2 static unroll; all column ----
    # ---- slices are 128-lane aligned (HW = 256), all row slices 8-sublane.   ----
    for b in range(B):
        lo, hi = b * HW, (b + 1) * HW
        blk = acc[:, lo:hi]                                   # (G, HW) = (32, 256)
        mean = jnp.mean(blk)
        var = jnp.mean((blk - mean) ** 2)
        g = (blk - mean) * lax.rsqrt(var + EPS)

        ig = jax.nn.sigmoid(g[0 * HID:1 * HID, :])
        fg = jax.nn.sigmoid(g[1 * HID:2 * HID, :])
        cg = jnp.tanh(g[2 * HID:3 * HID, :])
        og = jax.nn.sigmoid(g[3 * HID:4 * HID, :])
        cy = fg * cx_ref[:, lo:hi] + ig * cg
        hy = og * jnp.tanh(cy)
        # TODO(synk): nn.Dropout treated as identity (eval mode); training-mode RNG mask omitted.

        out_ref[0, :, lo:hi] = hy
        out_ref[1, :, lo:hi] = cy
        out_ref[2, :, lo:hi] = ig
        out_ref[3, :, lo:hi] = fg
        out_ref[4, :, lo:hi] = cg
        out_ref[5, :, lo:hi] = og


def _im2col_t(x_nchw, pad, k):
    """NCHW -> (k*k*C, B*HW) patch matrix.  K ordered (dy, dx, cin); column n = b*HW + y*W + x."""
    c = x_nchw.shape[1]
    xp = jnp.pad(x_nchw, ((0, 0), (0, 0), (pad, pad), (pad, pad)))
    taps = [xp[:, :, dy:dy + H, dx:dx + W] for dy in range(k) for dx in range(k)]
    p = jnp.stack(taps, axis=0)                    # (k*k, B, C, H, W)
    p = jnp.transpose(p, (0, 2, 1, 3, 4))          # (k*k, C, B, H, W)
    return p.reshape(k * k * c, NTOT)


def conv_lstm_cell(x0, motor, hx, cx, params):
    """x0: (B,CIN,H,W), motor: (B,CM), hx/cx: (B,HID,H,W) -- PyTorch NCHW."""
    wl, bl, wb, bb, wm, bm = params

    # ---- wrapper glue: im2col (transposed, lane-dense), weight concat, bias fusion ----
    patches = jnp.concatenate([_im2col_t(hx, 2, 5), _im2col_t(x0, 1, 3)], axis=0)
    patches = jnp.pad(patches, ((0, K_PAD - K_RAW), (0, 0))).astype(jnp.bfloat16)

    w_lat = jnp.transpose(wl, (3, 0, 1, 2)).reshape(G, K_LAT)   # K order (dy, dx, cin)
    w_bu = jnp.transpose(wb, (3, 0, 1, 2)).reshape(G, K_BU)
    wcat = jnp.concatenate([w_lat, w_bu], axis=1)
    wcat = jnp.pad(wcat, ((0, 0), (0, K_PAD - K_RAW))).astype(jnp.bfloat16)

    # ConvTranspose2d(CM -> 4*HID, k=H, p=0) on a 1x1 spatial input is an outer
    # product -> precompute in XLA and fold with all three conv biases.
    motor_g = jnp.einsum('bc,chwo->obhw', motor, wm).reshape(G, NTOT)
    bias_all = motor_g + (bl + bb + bm).reshape(G, 1)           # (G, B*HW) f32

    cx_t = jnp.transpose(cx, (1, 0, 2, 3)).reshape(HID, NTOT)   # (8, 512) lane-dense

    packed = pl.pallas_call(
        convlstm_kernel,
        out_shape=jax.ShapeDtypeStruct((6, HID, NTOT), jnp.float32),
        grid_spec=pltpu.PrefetchScalarGridSpec(
            num_scalar_prefetch=0,
            # Single invocation: the whole problem (<1 MiB) fits VMEM on every
            # generation; a per-batch grid only added per-step overhead.
            # (On v7x one could shard B across the two TCs; not worth it here.)
            grid=(1,),
            in_specs=[
                pl.BlockSpec((K_PAD, NTOT), lambda i: (0, 0)),   # im2col patches (bf16)
                pl.BlockSpec((G, K_PAD), lambda i: (0, 0)),      # fused conv weight (bf16)
                pl.BlockSpec((G, NTOT), lambda i: (0, 0)),       # motor term + biases (f32)
                pl.BlockSpec((HID, NTOT), lambda i: (0, 0)),     # cx (f32)
            ],
            out_specs=pl.BlockSpec((6, HID, NTOT), lambda i: (0, 0, 0)),
        ),
        compiler_params=pltpu.CompilerParams(
            dimension_semantics=("arbitrary",),
            vmem_limit_bytes=4 * 1024 * 1024,
        ),
    )(patches, wcat, bias_all, cx_t)

    def to_nchw(t):      # (HID, B*HW) -> (B, HID, H, W)
        return jnp.transpose(t.reshape(HID, B, H, W), (1, 0, 2, 3))

    hy, cy, ig, fg, cg, og = (to_nchw(packed[i]) for i in range(6))
    return hy, cy, [ig, fg, cg, og]


def reference(x0, motor, hx, cx, params):
    """Pure-JAX reference (for numerical verification)."""
    wl, bl, wb, bb, wm, bm = params
    dn = ('NHWC', 'HWIO', 'NHWC')
    hx_nhwc = jnp.transpose(hx, (0, 2, 3, 1))
    x0_nhwc = jnp.transpose(x0, (0, 2, 3, 1))
    cx_nhwc = jnp.transpose(cx, (0, 2, 3, 1))
    gates = lax.conv_general_dilated(hx_nhwc, wl, (1, 1), 'SAME',
                                     dimension_numbers=dn) + bl[0]
    gates = gates + lax.conv_general_dilated(x0_nhwc, wb, (1, 1), 'SAME',
                                             dimension_numbers=dn) + bb[0]
    gates = gates + jnp.einsum('bc,chwo->bhwo', motor, wm) + bm[0]
    mean = gates.mean(axis=(1, 2, 3), keepdims=True)
    var = ((gates - mean) ** 2).mean(axis=(1, 2, 3), keepdims=True)
    g = (gates - mean) / jnp.sqrt(var + EPS)
    ig = jax.nn.sigmoid(g[..., 0 * HID:1 * HID])
    fg = jax.nn.sigmoid(g[..., 1 * HID:2 * HID])
    cg = jnp.tanh(g[..., 2 * HID:3 * HID])
    og = jax.nn.sigmoid(g[..., 3 * HID:4 * HID])
    cy = fg * cx_nhwc + ig * cg
    hy = og * jnp.tanh(cy)
    to_nchw = lambda t: jnp.transpose(t, (0, 3, 1, 2))
    return to_nchw(hy), to_nchw(cy)


if __name__ == "__main__":
    key = jax.random.PRNGKey(0)
    ks = jax.random.split(key, 10)
    x0 = jax.random.normal(ks[0], (B, CIN, H, W), jnp.float32)
    motor = jax.random.normal(ks[1], (B, CM), jnp.float32)
    hx = jax.random.normal(ks[2], (B, HID, H, W), jnp.float32)
    cx = jax.random.normal(ks[3], (B, HID, H, W), jnp.float32)

    # Deterministic synthetic parameters (shapes per the module's __init__).
    sc = 0.05
    wl = sc * jax.random.normal(ks[4], (5, 5, HID, G), jnp.float32)   # conv_lateral W (HWIO)
    bl = sc * jax.random.normal(ks[5], (1, G), jnp.float32)           # conv_lateral b
    wb = sc * jax.random.normal(ks[6], (3, 3, CIN, G), jnp.float32)   # conv_bottomup W (HWIO)
    bb = sc * jax.random.normal(ks[7], (1, G), jnp.float32)           # conv_bottomup b
    wm = sc * jax.random.normal(ks[8], (CM, H, W, G), jnp.float32)    # conv_lateral_from_motor W
    bm = sc * jax.random.normal(ks[9], (1, G), jnp.float32)           # conv_lateral_from_motor b

    # The kernel's fused conv matmul uses bf16 operands (f32 accumulation).
    # Round those operands to bf16-representable values so the f32 reference
    # consumes identical data and the comparison stays tight.
    rb = lambda t: t.astype(jnp.bfloat16).astype(jnp.float32)
    x0, hx, motor, wl, wb, wm = rb(x0), rb(hx), rb(motor), rb(wl), rb(wb), rb(wm)

    params = (wl, bl, wb, bb, wm, bm)

    hy, cy, gates = conv_lstm_cell(x0, motor, hx, cx, params)
    jax.block_until_ready((hy, cy, gates))

    hy_ref, cy_ref = reference(x0, motor, hx, cx, params)
    assert jnp.allclose(hy, hy_ref, atol=2e-4, rtol=2e-4), \
        float(jnp.max(jnp.abs(hy - hy_ref)))
    assert jnp.allclose(cy, cy_ref, atol=2e-4, rtol=2e-4), \
        float(jnp.max(jnp.abs(cy - cy_ref)))

    print("KERNEL_OK")
</pallas_src>

<mosaic_0001>
module attributes {stable_mosaic.version = 11 : i64} {
  func.func @convlstm_kernel(%arg0: i32, %arg1: memref<256x512xbf16, #tpu.memory_space<vmem>>, %arg2: memref<32x256xbf16, #tpu.memory_space<vmem>>, %arg3: memref<32x512xf32, #tpu.memory_space<vmem>>, %arg4: memref<8x512xf32, #tpu.memory_space<vmem>>, %arg5: memref<6x8x512xf32, #tpu.memory_space<vmem>>) attributes {dimension_semantics = [#tpu.dimension_semantics<arbitrary>], iteration_bounds = array<i64: 1>, scalar_prefetch = 0 : i64, scratch_operands = 0 : i64, tpu.core_type = #tpu.core_type<tc>, window_params = [{pipeline_mode = #tpu.pipeline_mode<synchronous>, transform_indices = @transform_0, window_bounds = array<i64: 256, 512>}, {pipeline_mode = #tpu.pipeline_mode<synchronous>, transform_indices = @transform_1, window_bounds = array<i64: 32, 256>}, {pipeline_mode = #tpu.pipeline_mode<synchronous>, transform_indices = @transform_2, window_bounds = array<i64: 32, 512>}, {pipeline_mode = #tpu.pipeline_mode<synchronous>, transform_indices = @transform_3, window_bounds = array<i64: 8, 512>}, {pipeline_mode = #tpu.pipeline_mode<synchronous>, transform_indices = @transform_4, window_bounds = array<i64: 6, 8, 512>}]} {
    %c0 = arith.constant 0 : index
    %c0_0 = arith.constant 0 : index
    %0 = vector.load %arg2[%c0, %c0_0] : memref<32x256xbf16, #tpu.memory_space<vmem>>, vector<32x256xbf16>
    %c0_1 = arith.constant 0 : index
    %c0_2 = arith.constant 0 : index
    %1 = vector.load %arg1[%c0_1, %c0_2] : memref<256x512xbf16, #tpu.memory_space<vmem>>, vector<256x512xbf16>
    %cst = arith.constant dense<0.000000e+00> : vector<32x512xf32>
    %2 = tpu.matmul %0, %1, %cst {dimension_numbers = #tpu.dot_dimension_numbers<[1], [0], [0], [1], [0, 0, 1, 1], [], []>} : vector<32x256xbf16>, vector<256x512xbf16>, vector<32x512xf32> -> vector<32x512xf32>
    %c0_3 = arith.constant 0 : index
    %c0_4 = arith.constant 0 : index
    %3 = vector.load %arg3[%c0_3, %c0_4] : memref<32x512xf32, #tpu.memory_space<vmem>>, vector<32x512xf32>
    %4 = arith.addf %2, %3 : vector<32x512xf32>
    %5 = vector.extract_strided_slice %4 {offsets = [0, 0], sizes = [32, 256], strides = [1, 1]} : vector<32x512xf32> to vector<32x256xf32>
    %6 = vector.shape_cast %5 : vector<32x256xf32> to vector<1x32x256xf32>
    %cst_5 = arith.constant dense<0.000000e+00> : vector<1xf32>
    %7 = vector.multi_reduction <add>, %6, %cst_5 [1, 2] : vector<1x32x256xf32> to vector<1xf32>
    %8 = vector.shape_cast %7 : vector<1xf32> to vector<1x1x1xf32>
    %9 = vector.extract %8[0, 0, 0] : f32 from vector<1x1x1xf32>
    %cst_6 = arith.constant 8.192000e+03 : f32
    %10 = arith.divf %9, %cst_6 : f32
    %11 = vector.broadcast %10 : f32 to vector<32x256xf32>
    %12 = arith.subf %5, %11 : vector<32x256xf32>
    %13 = arith.mulf %12, %12 : vector<32x256xf32>
    %14 = vector.shape_cast %13 : vector<32x256xf32> to vector<1x32x256xf32>
    %cst_7 = arith.constant dense<0.000000e+00> : vector<1xf32>
    %15 = vector.multi_reduction <add>, %14, %cst_7 [1, 2] : vector<1x32x256xf32> to vector<1xf32>
    %16 = vector.shape_cast %15 : vector<1xf32> to vector<1x1x1xf32>
    %17 = vector.extract %16[0, 0, 0] : f32 from vector<1x1x1xf32>
    %cst_8 = arith.constant 8.192000e+03 : f32
    %18 = arith.divf %17, %cst_8 : f32
    %19 = vector.broadcast %10 : f32 to vector<32x256xf32>
    %20 = arith.subf %5, %19 : vector<32x256xf32>
    %cst_9 = arith.constant 9.99999974E-6 : f32
    %21 = arith.addf %18, %cst_9 : f32
    %22 = math.rsqrt %21 : f32
    %23 = vector.broadcast %22 : f32 to vector<32x256xf32>
    %24 = arith.mulf %20, %23 : vector<32x256xf32>
    %25 = vector.extract_strided_slice %24 {offsets = [0, 0], sizes = [8, 256], strides = [1, 1]} : vector<32x256xf32> to vector<8x256xf32>
    %26 = arith.negf %25 : vector<8x256xf32>
    %27 = math.exp %26 : vector<8x256xf32>
    %cst_10 = arith.constant 1.000000e+00 : f32
    %28 = vector.broadcast %cst_10 : f32 to vector<8x256xf32>
    %29 = arith.addf %28, %27 : vector<8x256xf32>
    %30 = arith.divf %28, %29 : vector<8x256xf32>
    %31 = vector.extract_strided_slice %24 {offsets = [8, 0], sizes = [8, 256], strides = [1, 1]} : vector<32x256xf32> to vector<8x256xf32>
    %32 = arith.negf %31 : vector<8x256xf32>
    %33 = math.exp %32 : vector<8x256xf32>
    %cst_11 = arith.constant 1.000000e+00 : f32
    %34 = vector.broadcast %cst_11 : f32 to vector<8x256xf32>
    %35 = arith.addf %34, %33 : vector<8x256xf32>
    %36 = arith.divf %34, %35 : vector<8x256xf32>
    %37 = vector.extract_strided_slice %24 {offsets = [16, 0], sizes = [8, 256], strides = [1, 1]} : vector<32x256xf32> to vector<8x256xf32>
    %38 = math.tanh %37 : vector<8x256xf32>
    %39 = vector.extract_strided_slice %24 {offsets = [24, 0], sizes = [8, 256], strides = [1, 1]} : vector<32x256xf32> to vector<8x256xf32>
    %40 = arith.negf %39 : vector<8x256xf32>
    %41 = math.exp %40 : vector<8x256xf32>
    %cst_12 = arith.constant 1.000000e+00 : f32
    %42 = vector.broadcast %cst_12 : f32 to vector<8x256xf32>
    %43 = arith.addf %42, %41 : vector<8x256xf32>
    %44 = arith.divf %42, %43 : vector<8x256xf32>
    %c0_13 = arith.constant 0 : index
    %c0_14 = arith.constant 0 : index
    %45 = vector.load %arg4[%c0_13, %c0_14] : memref<8x512xf32, #tpu.memory_space<vmem>>, vector<8x256xf32>
    %46 = arith.mulf %36, %45 : vector<8x256xf32>
    %47 = arith.mulf %30, %38 : vector<8x256xf32>
    %48 = arith.addf %46, %47 : vector<8x256xf32>
    %49 = math.tanh %48 : vector<8x256xf32>
    %50 = arith.mulf %44, %49 : vector<8x256xf32>
    %c0_15 = arith.constant 0 : index
    %c0_16 = arith.constant 0 : index
    %c0_17 = arith.constant 0 : index
    %51 = vector.load %arg5[%c0_15, %c0_16, %c0_17] : memref<6x8x512xf32, #tpu.memory_space<vmem>>, vector<1x8x256xf32>
    %52 = vector.shape_cast %51 : vector<1x8x256xf32> to vector<8x256xf32>
    %53 = vector.shape_cast %50 : vector<8x256xf32> to vector<1x8x256xf32>
    tpu.vector_store %arg5[%c0_15, %c0_16, %c0_17], %53 {strides = array<i32>} : memref<6x8x512xf32, #tpu.memory_space<vmem>>, vector<1x8x256xf32>,
    %c1 = arith.constant 1 : index
    %c0_18 = arith.constant 0 : index
    %c0_19 = arith.constant 0 : index
    %54 = vector.load %arg5[%c1, %c0_18, %c0_19] : memref<6x8x512xf32, #tpu.memory_space<vmem>>, vector<1x8x256xf32>
    %55 = vector.shape_cast %54 : vector<1x8x256xf32> to vector<8x256xf32>
    %56 = vector.shape_cast %48 : vector<8x256xf32> to vector<1x8x256xf32>
    tpu.vector_store %arg5[%c1, %c0_18, %c0_19], %56 {strides = array<i32>} : memref<6x8x512xf32, #tpu.memory_space<vmem>>, vector<1x8x256xf32>,
    %c2 = arith.constant 2 : index
    %c0_20 = arith.constant 0 : index
    %c0_21 = arith.constant 0 : index
    %57 = vector.load %arg5[%c2, %c0_20, %c0_21] : memref<6x8x512xf32, #tpu.memory_space<vmem>>, vector<1x8x256xf32>
    %58 = vector.shape_cast %57 : vector<1x8x256xf32> to vector<8x256xf32>
    %59 = vector.shape_cast %30 : vector<8x256xf32> to vector<1x8x256xf32>
    tpu.vector_store %arg5[%c2, %c0_20, %c0_21], %59 {strides = array<i32>} : memref<6x8x512xf32, #tpu.memory_space<vmem>>, vector<1x8x256xf32>,
    %c3 = arith.constant 3 : index
    %c0_22 = arith.constant 0 : index
    %c0_23 = arith.constant 0 : index
    %60 = vector.load %arg5[%c3, %c0_22, %c0_23] : memref<6x8x512xf32, #tpu.memory_space<vmem>>, vector<1x8x256xf32>
    %61 = vector.shape_cast %60 : vector<1x8x256xf32> to vector<8x256xf32>
    %62 = vector.shape_cast %36 : vector<8x256xf32> to vector<1x8x256xf32>
    tpu.vector_store %arg5[%c3, %c0_22, %c0_23], %62 {strides = array<i32>} : memref<6x8x512xf32, #tpu.memory_space<vmem>>, vector<1x8x256xf32>,
    %c4 = arith.constant 4 : index
    %c0_24 = arith.constant 0 : index
    %c0_25 = arith.constant 0 : index
    %63 = vector.load %arg5[%c4, %c0_24, %c0_25] : memref<6x8x512xf32, #tpu.memory_space<vmem>>, vector<1x8x256xf32>
    %64 = vector.shape_cast %63 : vector<1x8x256xf32> to vector<8x256xf32>
    %65 = vector.shape_cast %38 : vector<8x256xf32> to vector<1x8x256xf32>
    tpu.vector_store %arg5[%c4, %c0_24, %c0_25], %65 {strides = array<i32>} : memref<6x8x512xf32, #tpu.memory_space<vmem>>, vector<1x8x256xf32>,
    %c5 = arith.constant 5 : index
    %c0_26 = arith.constant 0 : index
    %c0_27 = arith.constant 0 : index
    %66 = vector.load %arg5[%c5, %c0_26, %c0_27] : memref<6x8x512xf32, #tpu.memory_space<vmem>>, vector<1x8x256xf32>
    %67 = vector.shape_cast %66 : vector<1x8x256xf32> to vector<8x256xf32>
    %68 = vector.shape_cast %44 : vector<8x256xf32> to vector<1x8x256xf32>
    tpu.vector_store %arg5[%c5, %c0_26, %c0_27], %68 {strides = array<i32>} : memref<6x8x512xf32, #tpu.memory_space<vmem>>, vector<1x8x256xf32>,
    %69 = vector.extract_strided_slice %4 {offsets = [0, 256], sizes = [32, 256], strides = [1, 1]} : vector<32x512xf32> to vector<32x256xf32>
    %70 = vector.shape_cast %69 : vector<32x256xf32> to vector<1x32x256xf32>
    %cst_28 = arith.constant dense<0.000000e+00> : vector<1xf32>
    %71 = vector.multi_reduction <add>, %70, %cst_28 [1, 2] : vector<1x32x256xf32> to vector<1xf32>
    %72 = vector.shape_cast %71 : vector<1xf32> to vector<1x1x1xf32>
    %73 = vector.extract %72[0, 0, 0] : f32 from vector<1x1x1xf32>
    %cst_29 = arith.constant 8.192000e+03 : f32
    %74 = arith.divf %73, %cst_29 : f32
    %75 = vector.broadcast %74 : f32 to vector<32x256xf32>
    %76 = arith.subf %69, %75 : vector<32x256xf32>
    %77 = arith.mulf %76, %76 : vector<32x256xf32>
    %78 = vector.shape_cast %77 : vector<32x256xf32> to vector<1x32x256xf32>
    %cst_30 = arith.constant dense<0.000000e+00> : vector<1xf32>
    %79 = vector.multi_reduction <add>, %78, %cst_30 [1, 2] : vector<1x32x256xf32> to vector<1xf32>
    %80 = vector.shape_cast %79 : vector<1xf32> to vector<1x1x1xf32>
    %81 = vector.extract %80[0, 0, 0] : f32 from vector<1x1x1xf32>
    %cst_31 = arith.constant 8.192000e+03 : f32
    %82 = arith.divf %81, %cst_31 : f32
    %83 = vector.broadcast %74 : f32 to vector<32x256xf32>
    %84 = arith.subf %69, %83 : vector<32x256xf32>
    %cst_32 = arith.constant 9.99999974E-6 : f32
    %85 = arith.addf %82, %cst_32 : f32
    %86 = math.rsqrt %85 : f32
    %87 = vector.broadcast %86 : f32 to vector<32x256xf32>
    %88 = arith.mulf %84, %87 : vector<32x256xf32>
    %89 = vector.extract_strided_slice %88 {offsets = [0, 0], sizes = [8, 256], strides = [1, 1]} : vector<32x256xf32> to vector<8x256xf32>
    %90 = arith.negf %89 : vector<8x256xf32>
    %91 = math.exp %90 : vector<8x256xf32>
    %cst_33 = arith.constant 1.000000e+00 : f32
    %92 = vector.broadcast %cst_33 : f32 to vector<8x256xf32>
    %93 = arith.addf %92, %91 : vector<8x256xf32>
    %94 = arith.divf %92, %93 : vector<8x256xf32>
    %95 = vector.extract_strided_slice %88 {offsets = [8, 0], sizes = [8, 256], strides = [1, 1]} : vector<32x256xf32> to vector<8x256xf32>
    %96 = arith.negf %95 : vector<8x256xf32>
    %97 = math.exp %96 : vector<8x256xf32>
    %cst_34 = arith.constant 1.000000e+00 : f32
    %98 = vector.broadcast %cst_34 : f32 to vector<8x256xf32>
    %99 = arith.addf %98, %97 : vector<8x256xf32>
    %100 = arith.divf %98, %99 : vector<8x256xf32>
    %101 = vector.extract_strided_slice %88 {offsets = [16, 0], sizes = [8, 256], strides = [1, 1]} : vector<32x256xf32> to vector<8x256xf32>
    %102 = math.tanh %101 : vector<8x256xf32>
    %103 = vector.extract_strided_slice %88 {offsets = [24, 0], sizes = [8, 256], strides = [1, 1]} : vector<32x256xf32> to vector<8x256xf32>
    %104 = arith.negf %103 : vector<8x256xf32>
    %105 = math.exp %104 : vector<8x256xf32>
    %cst_35 = arith.constant 1.000000e+00 : f32
    %106 = vector.broadcast %cst_35 : f32 to vector<8x256xf32>
    %107 = arith.addf %106, %105 : vector<8x256xf32>
    %108 = arith.divf %106, %107 : vector<8x256xf32>
    %c0_36 = arith.constant 0 : index
    %c256 = arith.constant 256 : index
    %109 = vector.load %arg4[%c0_36, %c256] : memref<8x512xf32, #tpu.memory_space<vmem>>, vector<8x256xf32>
    %110 = arith.mulf %100, %109 : vector<8x256xf32>
    %111 = arith.mulf %94, %102 : vector<8x256xf32>
    %112 = arith.addf %110, %111 : vector<8x256xf32>
    %113 = math.tanh %112 : vector<8x256xf32>
    %114 = arith.mulf %108, %113 : vector<8x256xf32>
    %c0_37 = arith.constant 0 : index
    %c0_38 = arith.constant 0 : index
    %c256_39 = arith.constant 256 : index
    %115 = vector.load %arg5[%c0_37, %c0_38, %c256_39] : memref<6x8x512xf32, #tpu.memory_space<vmem>>, vector<1x8x256xf32>
    %116 = vector.shape_cast %115 : vector<1x8x256xf32> to vector<8x256xf32>
    %117 = vector.shape_cast %114 : vector<8x256xf32> to vector<1x8x256xf32>
    tpu.vector_store %arg5[%c0_37, %c0_38, %c256_39], %117 {strides = array<i32>} : memref<6x8x512xf32, #tpu.memory_space<vmem>>, vector<1x8x256xf32>,
    %c1_40 = arith.constant 1 : index
    %c0_41 = arith.constant 0 : index
    %c256_42 = arith.constant 256 : index
    %118 = vector.load %arg5[%c1_40, %c0_41, %c256_42] : memref<6x8x512xf32, #tpu.memory_space<vmem>>, vector<1x8x256xf32>
    %119 = vector.shape_cast %118 : vector<1x8x256xf32> to vector<8x256xf32>
    %120 = vector.shape_cast %112 : vector<8x256xf32> to vector<1x8x256xf32>
    tpu.vector_store %arg5[%c1_40, %c0_41, %c256_42], %120 {strides = array<i32>} : memref<6x8x512xf32, #tpu.memory_space<vmem>>, vector<1x8x256xf32>,
    %c2_43 = arith.constant 2 : index
    %c0_44 = arith.constant 0 : index
    %c256_45 = arith.constant 256 : index
    %121 = vector.load %arg5[%c2_43, %c0_44, %c256_45] : memref<6x8x512xf32, #tpu.memory_space<vmem>>, vector<1x8x256xf32>
    %122 = vector.shape_cast %121 : vector<1x8x256xf32> to vector<8x256xf32>
    %123 = vector.shape_cast %94 : vector<8x256xf32> to vector<1x8x256xf32>
    tpu.vector_store %arg5[%c2_43, %c0_44, %c256_45], %123 {strides = array<i32>} : memref<6x8x512xf32, #tpu.memory_space<vmem>>, vector<1x8x256xf32>,
    %c3_46 = arith.constant 3 : index
    %c0_47 = arith.constant 0 : index
    %c256_48 = arith.constant 256 : index
    %124 = vector.load %arg5[%c3_46, %c0_47, %c256_48] : memref<6x8x512xf32, #tpu.memory_space<vmem>>, vector<1x8x256xf32>
    %125 = vector.shape_cast %124 : vector<1x8x256xf32> to vector<8x256xf32>
    %126 = vector.shape_cast %100 : vector<8x256xf32> to vector<1x8x256xf32>
    tpu.vector_store %arg5[%c3_46, %c0_47, %c256_48], %126 {strides = array<i32>} : memref<6x8x512xf32, #tpu.memory_space<vmem>>, vector<1x8x256xf32>,
    %c4_49 = arith.constant 4 : index
    %c0_50 = arith.constant 0 : index
    %c256_51 = arith.constant 256 : index
    %127 = vector.load %arg5[%c4_49, %c0_50, %c256_51] : memref<6x8x512xf32, #tpu.memory_space<vmem>>, vector<1x8x256xf32>
    %128 = vector.shape_cast %127 : vector<1x8x256xf32> to vector<8x256xf32>
    %129 = vector.shape_cast %102 : vector<8x256xf32> to vector<1x8x256xf32>
    tpu.vector_store %arg5[%c4_49, %c0_50, %c256_51], %129 {strides = array<i32>} : memref<6x8x512xf32, #tpu.memory_space<vmem>>, vector<1x8x256xf32>,
    %c5_52 = arith.constant 5 : index
    %c0_53 = arith.constant 0 : index
    %c256_54 = arith.constant 256 : index
    %130 = vector.load %arg5[%c5_52, %c0_53, %c256_54] : memref<6x8x512xf32, #tpu.memory_space<vmem>>, vector<1x8x256xf32>
    %131 = vector.shape_cast %130 : vector<1x8x256xf32> to vector<8x256xf32>
    %132 = vector.shape_cast %108 : vector<8x256xf32> to vector<1x8x256xf32>
    tpu.vector_store %arg5[%c5_52, %c0_53, %c256_54], %132 {strides = array<i32>} : memref<6x8x512xf32, #tpu.memory_space<vmem>>, vector<1x8x256xf32>,
    return
  }
  func.func @transform_0(%arg0: i32) -> (i32, i32) {
    %c0_i32 = arith.constant 0 : i32
    %c0_i32_0 = arith.constant 0 : i32
    %c0_i32_1 = arith.constant 0 : i32
    return %c0_i32, %c0_i32_0 : i32, i32
  }
  func.func @transform_1(%arg0: i32) -> (i32, i32) {
    %c0_i32 = arith.constant 0 : i32
    %c0_i32_0 = arith.constant 0 : i32
    %c0_i32_1 = arith.constant 0 : i32
    return %c0_i32, %c0_i32_0 : i32, i32
  }
  func.func @transform_2(%arg0: i32) -> (i32, i32) {
    %c0_i32 = arith.constant 0 : i32
    %c0_i32_0 = arith.constant 0 : i32
    %c0_i32_1 = arith.constant 0 : i32
    return %c0_i32, %c0_i32_0 : i32, i32
  }
  func.func @transform_3(%arg0: i32) -> (i32, i32) {
    %c0_i32 = arith.constant 0 : i32
    %c0_i32_0 = arith.constant 0 : i32
    %c0_i32_1 = arith.constant 0 : i32
    return %c0_i32, %c0_i32_0 : i32, i32
  }
  func.func @transform_4(%arg0: i32) -> (i32, i32, i32) {
    %c0_i32 = arith.constant 0 : i32
    %c0_i32_0 = arith.constant 0 : i32
    %c0_i32_1 = arith.constant 0 : i32
    %c0_i32_2 = arith.constant 0 : i32
    return %c0_i32, %c0_i32_0, %c0_i32_1 : i32, i32, i32
  }
}

</mosaic_0001>

<bundles_post_ra>
// kernel: tpu_custom_call.1
= control target key start
LH: loop header
LB: loop body
LE: loop exit
PB: predicated region body
PF: predicated region fallthrough
CT: control target
= control target key end

     0   :  { %9 = vsyncpa [#allocation3], 0  ;;  %s1486_s0 = inlined_call_operand.hbm [shape: bf16[256,512], index: 0, kind: input, shape index: {}]   ;;  %s1487_s1 = inlined_call_operand.hbm [shape: bf16[32,256], index: 1, kind: input, shape index: {}]   ;;  %s1488_s2 = inlined_call_operand.hbm [shape: f32[32,512], index: 2, kind: input, shape index: {}]   ;;  %s1489_s3 = inlined_call_operand.hbm [shape: f32[8,512], index: 3, kind: input, shape index: {}]   ;;  %s1490_s4 = inlined_call_operand.hbm [shape: f32[6,8,512], index: 4, kind: output, shape index: {}]  }
   0x1   :  { %10 = vsyncpa [#allocation6], 0 }
   0x2   :  { %11 = vsyncpa [#allocation9], 0 }
   0x3   :  { %12 = vsyncpa [#allocation4], 0  ;;  %s1276_s15 = smov [#allocation5]   ;;  %s1158_s19 = scalar_lea.hbm %s1487_s1, 512 }
   0x4   :  { %s30_s16 = sshll.u32 %s1276_s15, 4  ;;  %p1159_p0 = scmp.ne.s32.totalorder %s1487_s1, %s1158_s19  ;;  %s31_s16 = int_to_ptr.vmem [resolvable:$true] %s30_s16 }
   0x5   :  { %p1162_p1 = scmp.lt.u32.totalorder %s1158_s19, %s1487_s1 }
   0x7   :  { %p1164_p2 = pnand %p1162_p1, %p1159_p0 }
   0x9   :  { %1167 = shalt.err (!%p1164_p2)
}
   0xa   :  { %s1168_s24 = scalar_lea.vmem %s31_s16, 512  ;;  %p1173_p4 = scmp.lt.s32.totalorder %s31_s16, %s31_s16 }
   0xb   :  { %p1169_p3 = scmp.ne.s32.totalorder %s31_s16, %s1168_s24  ;;  %p1174_p5 = scmp.lt.s32.totalorder %s1168_s24, %s1168_s24 }
   0xd   :  { %p1175_p6 = por %p1174_p5, %p1173_p4 }
   0xf   :  { %p1176_p7 = pnand %p1175_p6, %p1169_p3 }
  0x11   :  { %1179 = shalt.err (!%p1176_p7)
}
  0x12   :  { %s1277_s25 = smov 128   ;;  %s1278_s26 = smov 8  }
  0x13   :  { %36 = dma.hbm_to_vmem [thread:$0]  %s1487_s1, 512, %s31_s16, [#allocation6], %s1277_s25, %s1277_s25, %s1278_s26  }
  0x14   :  { %s1279_s29 = smov [#allocation2]   ;;  %s1180_s7 = scalar_lea.hbm %s1486_s0, 8192 }
  0x15   :  { %s18_s30 = sshll.u32 %s1279_s29, 4  ;;  %p1181_p8 = scmp.ne.s32.totalorder %s1486_s0, %s1180_s7  ;;  %s19_s30 = int_to_ptr.vmem [resolvable:$true] %s18_s30 }
  0x16   :  { %p1184_p9 = scmp.lt.u32.totalorder %s1180_s7, %s1486_s0 }
  0x18   :  { %p1186_p10 = pnand %p1184_p9, %p1181_p8 }
  0x1a   :  { %1189 = shalt.err (!%p1186_p10)
}
  0x1b   :  { %s1190_s12 = scalar_lea.vmem %s19_s30, 8192  ;;  %p1195_p12 = scmp.lt.s32.totalorder %s19_s30, %s19_s30 }
  0x1c   :  { %p1191_p11 = scmp.ne.s32.totalorder %s19_s30, %s1190_s12  ;;  %p1196_p13 = scmp.lt.s32.totalorder %s1190_s12, %s1190_s12 }
  0x1e   :  { %p1197_p0 = por %p1196_p13, %p1195_p12 }
  0x20   :  { %p1198_p1 = pnand %p1197_p0, %p1191_p11 }
  0x22   :  { %1201 = shalt.err (!%p1198_p1)
}
  0x23   :  { %s1280_s1 = smov 256   ;;  %s1281_s13 = smov 16  }
  0x24   :  { %24 = dma.hbm_to_vmem [thread:$0]  %s1486_s0, 8192, %s19_s30, [#allocation3], %s1280_s1, %s1280_s1, %s1281_s13  }
  0x25   :  { %s1282_s16 = smov [#allocation7]   ;;  %s1202_s20 = scalar_lea.hbm %s1488_s2, 2048 }
  0x26   :  { %s42_s17 = sshll.u32 %s1282_s16, 4  ;;  %p1203_p2 = scmp.ne.s32.totalorder %s1488_s2, %s1202_s20  ;;  %s43_s17 = int_to_ptr.vmem [resolvable:$true] %s42_s17 }
  0x27   :  { %p1206_p3 = scmp.lt.u32.totalorder %s1202_s20, %s1488_s2 }
  0x29   :  { %p1208_p4 = pnand %p1206_p3, %p1203_p2 }
  0x2b   :  { %1211 = shalt.err (!%p1208_p4)
}
  0x2c   :  { %s1212_s25 = scalar_lea.vmem %s43_s17, 2048  ;;  %p1217_p6 = scmp.lt.s32.totalorder %s43_s17, %s43_s17 }
  0x2d   :  { %p1213_p5 = scmp.ne.s32.totalorder %s43_s17, %s1212_s25  ;;  %p1218_p7 = scmp.lt.s32.totalorder %s1212_s25, %s1212_s25 }
  0x2f   :  { %p1219_p8 = por %p1218_p7, %p1217_p6 }
  0x31   :  { %p1220_p9 = pnand %p1219_p8, %p1213_p5 }
  0x33   :  { %1223 = shalt.err (!%p1220_p9)
}
  0x34   :  { %s1283_s0 = smov 512   ;;  %s1284_s26 = smov 32  }
  0x35   :  { %48 = dma.hbm_to_vmem [thread:$0]  %s1488_s2, 2048, %s43_s17, [#allocation6], %s1283_s0, %s1283_s0, %s1284_s26  }
  0x36   :  { %s1285_s29 = smov [#allocation8]   ;;  %s1224_s7 = scalar_lea.hbm %s1489_s3, 512 }
  0x37   :  { %s55_s30 = sshll.u32 %s1285_s29, 4  ;;  %p1225_p10 = scmp.ne.s32.totalorder %s1489_s3, %s1224_s7  ;;  %s56_s30 = int_to_ptr.vmem [resolvable:$true] %s55_s30 }
  0x38   :  { %p1228_p11 = scmp.lt.u32.totalorder %s1224_s7, %s1489_s3 }
  0x3a   :  { %p1230_p12 = pnand %p1228_p11, %p1225_p10 }
  0x3c   :  { %1233 = shalt.err (!%p1230_p12)
}
  0x3d   :  { %s1234_s12 = scalar_lea.vmem %s56_s30, 512  ;;  %p1239_p0 = scmp.lt.s32.totalorder %s56_s30, %s56_s30 }
  0x3e   :  { %p1235_p13 = scmp.ne.s32.totalorder %s56_s30, %s1234_s12  ;;  %p1240_p1 = scmp.lt.s32.totalorder %s1234_s12, %s1234_s12 }
  0x40   :  { %p1241_p2 = por %p1240_p1, %p1239_p0 }
  0x42   :  { %p1242_p3 = pnand %p1241_p2, %p1235_p13 }
  0x44   :  { %1245 = shalt.err (!%p1242_p3)
}
  0x45   :  { %58 = dma.hbm_to_vmem [thread:$0]  %s1489_s3, 512, %s56_s30, [#allocation9]  }
  0x46   :  { %1268 = dma.done.wait [#allocation3], 8192  }
  0x47   :  { %1269 = vsyncadd [#allocation3], 4294959104 }
  0x48   :  { %1270 = dma.done.wait [#allocation6], 2560  }
  0x49   :  { %1271 = vsyncadd [#allocation6], 4294964736 }
  0x4a   :  { %1272 = dma.done.wait [#allocation9], 512  }
  0x4b   :  { %1273 = vsyncadd [#allocation9], 4294966784  ;;  %v988_v0 = vld [vmem:[#allocation2 + $0x4] ss:$16 sps:$4 sm:$0xff]   ;;  %v990_v1 = vld [vmem:[#allocation2] ss:$16 sps:$4 sm:$0xff]  }
  0x4c   :  { %495 = vmatprep.subr.bf16.mxu0 %v988_v0  ;;  %v991_v2 = vld [vmem:[#allocation2 + $0x24] ss:$16 sps:$4 sm:$0xff]   ;;  %v993_v3 = vld [vmem:[#allocation2 + $0x20] ss:$16 sps:$4 sm:$0xff]   ;;  %v1042_v36 = vld [vmem:[#allocation2 + $0xc] ss:$16 sps:$4 sm:$0xff]  }
  0x4d   :  { %496 = vmatpush1.bf16.msra.mxu0 %v990_v1  ;;  %v994_v4 = vld [vmem:[#allocation2 + $0x44] ss:$16 sps:$4 sm:$0xff]   ;;  %v996_v5 = vld [vmem:[#allocation2 + $0x40] ss:$16 sps:$4 sm:$0xff]   ;;  %v1044_v37 = vld [vmem:[#allocation2 + $0x8] ss:$16 sps:$4 sm:$0xff]   ;;  %548 = vmatprep.subr.bf16.mxu1 %v1042_v36 }
  0x4e   :  { %497 = vmatprep.subr.bf16.mxu0 %v991_v2  ;;  %v997_v6 = vld [vmem:[#allocation2 + $0x64] ss:$16 sps:$4 sm:$0xff]   ;;  %v999_v7 = vld [vmem:[#allocation2 + $0x60] ss:$16 sps:$4 sm:$0xff]   ;;  %549 = vmatpush1.bf16.msra.mxu1 %v1044_v37  ;;  %v1045_v38 = vld [vmem:[#allocation2 + $0x2c] ss:$16 sps:$4 sm:$0xff]  }
  0x4f   :  { %v1000_v8 = vld [vmem:[#allocation2 + $0x84] ss:$16 sps:$4 sm:$0xff]   ;;  %v1002_v9 = vld [vmem:[#allocation2 + $0x80] ss:$16 sps:$4 sm:$0xff]   ;;  %v1047_v39 = vld [vmem:[#allocation2 + $0x28] ss:$16 sps:$4 sm:$0xff]   ;;  %550 = vmatprep.subr.bf16.mxu1 %v1045_v38 }
  0x50   :  { %v1003_v10 = vld [vmem:[#allocation2 + $0xa4] ss:$16 sps:$4 sm:$0xff]   ;;  %v1005_v11 = vld [vmem:[#allocation2 + $0xa0] ss:$16 sps:$4 sm:$0xff]   ;;  %v1048_v40 = vld [vmem:[#allocation2 + $0x4c] ss:$16 sps:$4 sm:$0xff]  }
  0x51   :  { %498 = vmatpush1.bf16.msra.mxu0 %v993_v3  ;;  %v1006_v12 = vld [vmem:[#allocation2 + $0xc4] ss:$16 sps:$4 sm:$0xff]   ;;  %v1008_v14 = vld [vmem:[#allocation2 + $0xc0] ss:$16 sps:$4 sm:$0xff]   ;;  %v1050_v41 = vld [vmem:[#allocation2 + $0x48] ss:$16 sps:$4 sm:$0xff]  }
  0x52   :  { %499 = vmatprep.subr.bf16.mxu0 %v994_v4  ;;  %v1038_v13 = vld [vmem:[#allocation5 + $0x4] ss:$8 sps:$4 sm:$0xff]   ;;  %v1011_v16 = vld [vmem:[#allocation2 + $0xe0] ss:$16 sps:$4 sm:$0xff]   ;;  %v1365_v34 = vld [vmem:[#allocation5 + $0x14] ss:$8 sps:$4 sm:$0xff]   ;;  %551 = vmatpush1.bf16.msra.mxu1 %v1047_v39 }
  0x53   :  { %v1009_v15 = vld [vmem:[#allocation2 + $0xe4] ss:$16 sps:$4 sm:$0xff]   ;;  %527 = vmatprep.mubr.bf16.mxu0 %v1038_v13  ;;  %580 = vmatprep.mubr.bf16.mxu1 %v1038_v13  ;;  %v1014_v18 = vld [vmem:[#allocation2 + $0x100] ss:$16 sps:$4 sm:$0xff]   ;;  %v1051_v42 = vld [vmem:[#allocation2 + $0x6c] ss:$16 sps:$4 sm:$0xff]  }
  0x54   :  { %v1012_v17 = vld [vmem:[#allocation2 + $0x104] ss:$16 sps:$4 sm:$0xff]   ;;  %v1017_v20 = vld [vmem:[#allocation2 + $0x120] ss:$16 sps:$4 sm:$0xff]   ;;  %552 = vmatprep.subr.bf16.mxu1 %v1048_v40  ;;  %v1053_v43 = vld [vmem:[#allocation2 + $0x68] ss:$16 sps:$4 sm:$0xff]  }
  0x55   :  { %500 = vmatpush1.bf16.msra.mxu0 %v996_v5  ;;  %v1015_v19 = vld [vmem:[#allocation2 + $0x124] ss:$16 sps:$4 sm:$0xff]   ;;  %v1020_v22 = vld [vmem:[#allocation2 + $0x140] ss:$16 sps:$4 sm:$0xff]   ;;  %v1054_v44 = vld [vmem:[#allocation2 + $0x8c] ss:$16 sps:$4 sm:$0xff]  }
  0x56   :  { %501 = vmatprep.subr.bf16.mxu0 %v997_v6  ;;  %v1018_v21 = vld [vmem:[#allocation2 + $0x144] ss:$16 sps:$4 sm:$0xff]   ;;  %v1023_v24 = vld [vmem:[#allocation2 + $0x160] ss:$16 sps:$4 sm:$0xff]   ;;  %553 = vmatpush1.bf16.msra.mxu1 %v1050_v41  ;;  %v1056_v45 = vld [vmem:[#allocation2 + $0x88] ss:$16 sps:$4 sm:$0xff]  }
  0x57   :  { %v1021_v23 = vld [vmem:[#allocation2 + $0x164] ss:$16 sps:$4 sm:$0xff]   ;;  %v1026_v26 = vld [vmem:[#allocation2 + $0x180] ss:$16 sps:$4 sm:$0xff]   ;;  %554 = vmatprep.subr.bf16.mxu1 %v1051_v42  ;;  %v1057_v46 = vld [vmem:[#allocation2 + $0xac] ss:$16 sps:$4 sm:$0xff]  }
  0x58   :  { %v1024_v25 = vld [vmem:[#allocation2 + $0x184] ss:$16 sps:$4 sm:$0xff]   ;;  %v1029_v28 = vld [vmem:[#allocation2 + $0x1a0] ss:$16 sps:$4 sm:$0xff]   ;;  %v1059_v47 = vld [vmem:[#allocation2 + $0xa8] ss:$16 sps:$4 sm:$0xff]  }
  0x59   :  { %502 = vmatpush1.bf16.msra.mxu0 %v999_v7  ;;  %v1027_v27 = vld [vmem:[#allocation2 + $0x1a4] ss:$16 sps:$4 sm:$0xff]   ;;  %v1032_v30 = vld [vmem:[#allocation2 + $0x1c0] ss:$16 sps:$4 sm:$0xff]   ;;  %v1060_v48 = vld [vmem:[#allocation2 + $0xcc] ss:$16 sps:$4 sm:$0xff]  }
  0x5a   :  { %503 = vmatprep.subr.bf16.mxu0 %v1000_v8  ;;  %v1030_v29 = vld [vmem:[#allocation2 + $0x1c4] ss:$16 sps:$4 sm:$0xff]   ;;  %v1035_v32 = vld [vmem:[#allocation2 + $0x1e0] ss:$16 sps:$4 sm:$0xff]   ;;  %555 = vmatpush1.bf16.msra.mxu1 %v1053_v43  ;;  %v1062_v49 = vld [vmem:[#allocation2 + $0xc8] ss:$16 sps:$4 sm:$0xff]  }
  0x5b   :  { %v1033_v31 = vld [vmem:[#allocation2 + $0x1e4] ss:$16 sps:$4 sm:$0xff]   ;;  %v1363_v33 = vld [vmem:[#allocation5] ss:$8 sps:$4 sm:$0xff]   ;;  %v1369_v35 = vld [vmem:[#allocation5 + $0x10] ss:$8 sps:$4 sm:$0xff]   ;;  %556 = vmatprep.subr.bf16.mxu1 %v1054_v44 }
  0x5c   :  { %v1063_v50 = vld [vmem:[#allocation2 + $0xec] ss:$16 sps:$4 sm:$0xff]   ;;  %v1065_v51 = vld [vmem:[#allocation2 + $0xe8] ss:$16 sps:$4 sm:$0xff]   ;;  %v139_v4 = vld [vmem:[#allocation7] sm:$0xff]  ;;  %s1286_s24 = smov [#allocation10]  }
  0x5d   :  { %504 = vmatpush1.bf16.msra.mxu0 %v1002_v9  ;;  %v1066_v52 = vld [vmem:[#allocation2 + $0x10c] ss:$16 sps:$4 sm:$0xff]   ;;  %v1068_v53 = vld [vmem:[#allocation2 + $0x108] ss:$16 sps:$4 sm:$0xff]   ;;  %v143_v7 = vld [vmem:[#allocation7 + $0x20] sm:$0xff]  ;;  %s871_s25 = sshll.u32 %s1286_s24, 4  ;;  %s872_s25 = int_to_ptr.vmem [resolvable:$true] %s871_s25 }
  0x5e   :  { %505 = vmatprep.subr.bf16.mxu0 %v1003_v10  ;;  %557 = vmatpush1.bf16.msra.mxu1 %v1056_v45  ;;  %v1069_v54 = vld [vmem:[#allocation2 + $0x12c] ss:$16 sps:$4 sm:$0xff]   ;;  %v1071_v55 = vld [vmem:[#allocation2 + $0x128] ss:$16 sps:$4 sm:$0xff]   ;;  %v145_v38 = vld [vmem:[#allocation7 + $0x30] sm:$0xff]  ;;  %s1246_s27 = scalar_lea.vmem %s872_s25, 3072  ;;  %p1251_p5 = scmp.lt.s32.totalorder %s872_s25, %s872_s25 }
  0x5f   :  { %558 = vmatprep.subr.bf16.mxu1 %v1057_v46  ;;  %v1072_v56 = vld [vmem:[#allocation2 + $0x14c] ss:$16 sps:$4 sm:$0xff]   ;;  %v1074_v57 = vld [vmem:[#allocation2 + $0x148] ss:$16 sps:$4 sm:$0xff]   ;;  %p1247_p4 = scmp.ne.s32.totalorder %s872_s25, %s1246_s27  ;;  %p1252_p6 = scmp.lt.s32.totalorder %s1246_s27, %s1246_s27 }
  0x60   :  { %v1075_v58 = vld [vmem:[#allocation2 + $0x16c] ss:$16 sps:$4 sm:$0xff]   ;;  %v1077_v59 = vld [vmem:[#allocation2 + $0x168] ss:$16 sps:$4 sm:$0xff]  }
  0x61   :  { %506 = vmatpush1.bf16.msra.mxu0 %v1005_v11  ;;  %v1078_v60 = vld [vmem:[#allocation2 + $0x18c] ss:$16 sps:$4 sm:$0xff]   ;;  %v1080_v61 = vld [vmem:[#allocation2 + $0x188] ss:$16 sps:$4 sm:$0xff]   ;;  %p1253_p7 = por %p1252_p6, %p1251_p5 }
  0x62   :  { %507 = vmatprep.subr.bf16.mxu0 %v1006_v12  ;;  %559 = vmatpush1.bf16.msra.mxu1 %v1059_v47  ;;  %v1081_v62 = vld [vmem:[#allocation2 + $0x1ac] ss:$16 sps:$4 sm:$0xff]   ;;  %v1083_v63 = vld [vmem:[#allocation2 + $0x1a8] ss:$16 sps:$4 sm:$0xff]  }
  0x63   :  { %560 = vmatprep.subr.bf16.mxu1 %v1060_v48  ;;  %v1084_v0 = vld [vmem:[#allocation2 + $0x1cc] ss:$16 sps:$4 sm:$0xff]   ;;  %v1086_v1 = vld [vmem:[#allocation2 + $0x1c8] ss:$16 sps:$4 sm:$0xff]   ;;  %p1254_p8 = pnand %p1253_p7, %p1247_p4 }
  0x64   :  { %v1087_v2 = vld [vmem:[#allocation2 + $0x1ec] ss:$16 sps:$4 sm:$0xff]   ;;  %v1089_v3 = vld [vmem:[#allocation2 + $0x1e8] ss:$16 sps:$4 sm:$0xff]  }
  0x65   :  { %508 = vmatpush1.bf16.msra.mxu0 %v1008_v14  ;;  %v140_v5 = vld [vmem:[#allocation7 + $0x8] sm:$0xff]  ;;  %v142_v36 = vld [vmem:[#allocation7 + $0x18] sm:$0xff] }
  0x66   :  { %509 = vmatprep.subr.bf16.mxu0 %v1009_v15  ;;  %561 = vmatpush1.bf16.msra.mxu1 %v1062_v49  ;;  %v144_v13 = vld [vmem:[#allocation7 + $0x28] sm:$0xff]  ;;  %v146_v41 = vld [vmem:[#allocation7 + $0x38] sm:$0xff]  ;;  %v149_v49 = vld [vmem:[#allocation7 + $0x50] sm:$0xff] }
  0x67   :  { %562 = vmatprep.subr.bf16.mxu1 %v1063_v50  ;;  %v150_v50 = vld [vmem:[#allocation7 + $0x58] sm:$0xff] }
  0x69   :  { %510 = vmatpush1.bf16.msra.mxu0 %v1011_v16 }
  0x6a   :  { %511 = vmatprep.subr.bf16.mxu0 %v1012_v17  ;;  %563 = vmatpush1.bf16.msra.mxu1 %v1065_v51 }
  0x6b   :  { %564 = vmatprep.subr.bf16.mxu1 %v1066_v52 }
  0x6d   :  { %512 = vmatpush1.bf16.msra.mxu0 %v1014_v18  ;;  %v147_v18 = vld [vmem:[#allocation7 + $0x40] sm:$0xff] }
  0x6e   :  { %513 = vmatprep.subr.bf16.mxu0 %v1015_v19  ;;  %565 = vmatpush1.bf16.msra.mxu1 %v1068_v53  ;;  %v148_v19 = vld [vmem:[#allocation7 + $0x48] sm:$0xff]  ;;  %v153_v53 = vld [vmem:[#allocation7 + $0x70] sm:$0xff] }
  0x6f   :  { %566 = vmatprep.subr.bf16.mxu1 %v1069_v54 }
  0x71   :  { %514 = vmatpush1.bf16.msra.mxu0 %v1017_v20 }
  0x72   :  { %515 = vmatprep.subr.bf16.mxu0 %v1018_v21  ;;  %567 = vmatpush1.bf16.msra.mxu1 %v1071_v55 }
  0x73   :  { %568 = vmatprep.subr.bf16.mxu1 %v1072_v56 }
  0x75   :  { %516 = vmatpush1.bf16.msra.mxu0 %v1020_v22 }
  0x76   :  { %517 = vmatprep.subr.bf16.mxu0 %v1021_v23  ;;  %569 = vmatpush1.bf16.msra.mxu1 %v1074_v57 }
  0x77   :  { %570 = vmatprep.subr.bf16.mxu1 %v1075_v58 }
  0x79   :  { %518 = vmatpush1.bf16.msra.mxu0 %v1023_v24 }
  0x7a   :  { %519 = vmatprep.subr.bf16.mxu0 %v1024_v25  ;;  %571 = vmatpush1.bf16.msra.mxu1 %v1077_v59  ;;  %v151_v25 = vld [vmem:[#allocation7 + $0x60] sm:$0xff] }
  0x7b   :  { %572 = vmatprep.subr.bf16.mxu1 %v1078_v60  ;;  %v154_v60 = vld [vmem:[#allocation7 + $0x78] sm:$0xff] }
  0x7d   :  { %520 = vmatpush1.bf16.msra.mxu0 %v1026_v26 }
  0x7e   :  { %521 = vmatprep.subr.bf16.mxu0 %v1027_v27  ;;  %573 = vmatpush1.bf16.msra.mxu1 %v1080_v61 }
  0x7f   :  { %574 = vmatprep.subr.bf16.mxu1 %v1081_v62 }
  0x81   :  { %522 = vmatpush1.bf16.msra.mxu0 %v1029_v28 }
  0x82   :  { %523 = vmatprep.subr.bf16.mxu0 %v1030_v29  ;;  %575 = vmatpush1.bf16.msra.mxu1 %v1083_v63  ;;  %v152_v29 = vld [vmem:[#allocation7 + $0x68] sm:$0xff] }
  0x83   :  { %576 = vmatprep.subr.bf16.mxu1 %v1084_v0 }
  0x85   :  { %524 = vmatpush1.bf16.msra.mxu0 %v1032_v30 }
  0x86   :  { %525 = vmatprep.subr.bf16.mxu0 %v1033_v31  ;;  %577 = vmatpush1.bf16.msra.mxu1 %v1086_v1 }
  0x87   :  { %578 = vmatprep.subr.bf16.mxu1 %v1087_v2 }
  0x89   :  { %526 = vmatpush1.bf16.msra.mxu0 %v1035_v32 }
  0x8a   :  { %579 = vmatpush1.bf16.msra.mxu1 %v1089_v3 }
  0x8c   :  { %528 = vmatmul.mubr.bf16.vlgmr.msra.gmra.mrb[0].mxu0 %v1363_v33 }
  0x8d   :  { %537 = vmatprep.mubr.bf16.mxu0 %v1365_v34  ;;  %581 = vmatmul.mubr.bf16.vlgmr.msra.gmra.mrb[0].mxu1 %v1363_v33 }
  0x8e   :  { %590 = vmatprep.mubr.bf16.mxu1 %v1365_v34 }
  0x94   :  { %538 = vmatmul.mubr.bf16.gmra.mrb[4].mxu0 %v1369_v35 }
  0x95   :  { %591 = vmatmul.mubr.bf16.gmra.mrb[4].mxu1 %v1369_v35  ;;  %v141_v35 = vld [vmem:[#allocation7 + $0x10] sm:$0xff] }
 0x15f   :  { %v529_v6 = vpop.f32.mrb[0].mxu0 }
 0x160   :  { %v1375_v8 = vadd.f32 %v529_v6, %v139_v4  ;;  %v531_v9 = vpop.f32.mrb[1].mxu0  ;;  %v582_v37 = vpop.f32.mrb[0].mxu1 }
 0x161   :  { %v1377_v10 = vadd.f32 %v531_v9, %v140_v5  ;;  %v533_v11 = vpop.f32.mrb[2].mxu0  ;;  %v1393_v39 = vadd.f32 %v582_v37, %v141_v35  ;;  %v584_v40 = vpop.f32.mrb[1].mxu1 }
 0x162   :  { %v1379_v12 = vadd.f32 %v533_v11, %v143_v7  ;;  %v535_v14 = vpop.f32.mrb[3].mxu0  ;;  %v1395_v42 = vadd.f32 %v584_v40, %v142_v36  ;;  %v586_v43 = vpop.f32.mrb[2].mxu1 }
 0x163   :  { %v601_v15 = vadd.f32 %v1377_v10, %v1375_v8  ;;  %v1384_v17 = vadd.f32 %v535_v14, %v144_v13  ;;  %v1397_v44 = vadd.f32 %v586_v43, %v145_v38  ;;  %v588_v45 = vpop.f32.mrb[3].mxu1 }
 0x164   :  { %v736_v46 = vadd.f32 %v1395_v42, %v1393_v39  ;;  %v1401_v47 = vadd.f32 %v588_v45, %v146_v41 }
 0x165   :  { %v602_v16 = vadd.f32 %v601_v15, %v1379_v12 }
 0x166   :  { %v737_v48 = vadd.f32 %v736_v46, %v1397_v44 }
 0x167   :  { %v603_v20 = vadd.f32 %v602_v16, %v1384_v17  ;;  %v539_v21 = vpop.f32.mrb[4].mxu0 }
 0x168   :  { %v1387_v22 = vadd.f32 %v539_v21, %v147_v18  ;;  %v541_v23 = vpop.f32.mrb[5].mxu0  ;;  %v738_v51 = vadd.f32 %v737_v48, %v1401_v47  ;;  %v592_v52 = vpop.f32.mrb[4].mxu1 }
 0x169   :  { %v1389_v24 = vadd.f32 %v541_v23, %v148_v19  ;;  %v543_v26 = vpop.f32.mrb[6].mxu0  ;;  %v1405_v55 = vadd.f32 %v592_v52, %v149_v49  ;;  %v594_v56 = vpop.f32.mrb[5].mxu1 }
 0x16a   :  { %v604_v27 = vadd.f32 %v603_v20, %v1387_v22  ;;  %v545_v28 = vpop.f32.mrb[7].mxu0  ;;  %v544_v31 = vadd.f32 %v543_v26, %v151_v25  ;;  %v1407_v58 = vadd.f32 %v594_v56, %v150_v50  ;;  %v596_v59 = vpop.f32.mrb[6].mxu1 }
 0x16b   :  { %v546_v32 = vadd.f32 %v545_v28, %v152_v29  ;;  %v739_v61 = vadd.f32 %v738_v51, %v1405_v55  ;;  %v1410_v62 = vadd.f32 %v596_v59, %v153_v53  ;;  %v598_v63 = vpop.f32.mrb[7].mxu1 }
 0x16c   :  { %v605_v30 = vadd.f32 %v604_v27, %v1389_v24  ;;  %v1413_v2 = vadd.f32 %v598_v63, %v154_v60 }
 0x16d   :  { %v740_v1 = vadd.f32 %v739_v61, %v1407_v58 }
 0x16e   :  { %v606_v33 = vadd.f32 %v605_v30, %v544_v31 }
 0x16f   :  { %v741_v4 = vadd.f32 %v740_v1, %v1410_v62 }
 0x170   :  { %v607_v34 = vadd.f32 %v606_v33, %v546_v32 }
 0x171   :  { %v742_v6 = vadd.f32 %v741_v4, %v1413_v2 }
 0x172   :  { %608 = vadd.xlane.f32.xlu0 %v607_v34 }
 0x173   :  { %743 = vadd.xlane.f32.xlu1 %v742_v6 }
 0x1ff   :  { %v609_v54 = vpop.xlane.xlu0 %608 }
 0x200   :  { %v610_v57 = vrot.slane %v609_v54, 4 }
 0x202   :  { %v611_v0 = vadd.f32 %v610_v57, %v609_v54 }
 0x204   :  { %v612_v3 = vrot.slane %v611_v0, 2 }
 0x206   :  { %v613_v5 = vadd.f32 %v612_v3, %v611_v0 }
 0x208   :  { %v614_v7 = vrot.slane %v613_v5, 1 }
 0x20a   :  { %v615_v9 = vadd.f32 %v614_v7, %v613_v5 }
 0x20c   :  { %965 = vpush %v615_v9 }
 0x23d   :  { %s966_s3 = spop %965 }
 0x23e   :  { %s619_s13 = smul.f32 0.00012207031, %s966_s3 }
 0x240   :  { %v620_v11 = vstv %s619_s13 }
 0x241   :  { %v621_v13 = vsub.f32 %v1375_v8, %v620_v11  ;;  %v622_v14 = vsub.f32 %v1377_v10, %v620_v11  ;;  %v623_v15 = vsub.f32 %v1379_v12, %v620_v11  ;;  %v624_v16 = vsub.f32 %v1384_v17, %v620_v11 }
 0x242   :  { %v625_v20 = vsub.f32 %v1387_v22, %v620_v11  ;;  %v626_v25 = vsub.f32 %v1389_v24, %v620_v11  ;;  %v627_v28 = vsub.f32 %v544_v31, %v620_v11  ;;  %v628_v8 = vsub.f32 %v546_v32, %v620_v11  ;;  %v744_v31 = vpop.xlane.xlu1 %743 }
 0x243   :  { %v629_v18 = vmul.f32 %v621_v13, %v621_v13  ;;  %v630_v19 = vmul.f32 %v622_v14, %v622_v14  ;;  %v631_v21 = vmul.f32 %v623_v15, %v623_v15  ;;  %v632_v26 = vmul.f32 %v624_v16, %v624_v16 }
 0x244   :  { %v633_v29 = vmul.f32 %v625_v20, %v625_v20  ;;  %v634_v33 = vmul.f32 %v626_v25, %v626_v25  ;;  %v635_v34 = vmul.f32 %v627_v28, %v627_v28  ;;  %v636_v35 = vmul.f32 %v628_v8, %v628_v8 }
 0x245   :  { %v637_v23 = vadd.f32 %v630_v19, %v629_v18  ;;  %v745_v45 = vrot.slane %v744_v31, 4 }
 0x247   :  { %v638_v27 = vadd.f32 %v637_v23, %v631_v21  ;;  %v746_v46 = vadd.f32 %v745_v45, %v744_v31  ;;  %v708_v45 = vld [vmem:[#allocation8 + $0x8] sm:$0xff] }
 0x249   :  { %v639_v30 = vadd.f32 %v638_v27, %v632_v26  ;;  %v747_v32 = vrot.slane %v746_v46, 2 }
 0x24b   :  { %v640_v10 = vadd.f32 %v639_v30, %v633_v29  ;;  %v748_v49 = vadd.f32 %v747_v32, %v746_v46 }
 0x24d   :  { %v641_v12 = vadd.f32 %v640_v10, %v634_v33  ;;  %v749_v50 = vrot.slane %v748_v49, 1 }
 0x24f   :  { %v642_v17 = vadd.f32 %v641_v12, %v635_v34  ;;  %v750_v52 = vadd.f32 %v749_v50, %v748_v49 }
 0x251   :  { %v643_v36 = vadd.f32 %v642_v17, %v636_v35 }
 0x253   :  { %644 = vadd.xlane.f32.xlu0 %v643_v36 }
 0x2e0   :  { %v645_v37 = vpop.xlane.xlu0 %644 }
 0x2e1   :  { %v646_v22 = vrot.slane %v645_v37, 4 }
 0x2e3   :  { %v647_v38 = vadd.f32 %v646_v22, %v645_v37 }
 0x2e5   :  { %v648_v40 = vrot.slane %v647_v38, 2 }
 0x2e7   :  { %v649_v41 = vadd.f32 %v648_v40, %v647_v38 }
 0x2e9   :  { %v650_v24 = vrot.slane %v649_v41, 1 }
 0x2eb   :  { %v651_v43 = vadd.f32 %v650_v24, %v649_v41 }
 0x2ed   :  { %967 = vpush %v651_v43  ;;  %v707_v43 = vld [vmem:[#allocation8] sm:$0xff] }
 0x31e   :  { %s968_s14 = spop %967 }
 0x31f   :  { %s655_s15 = smul.f32 0.00012207031, %s968_s14 }
 0x321   :  { %s656_s16 = sadd.f32 1e-05, %s655_s15 }
 0x323   :  { %v657_v48 = vstv %s656_s16 }
 0x324   :  { %1090 = vrsqrt.f32 %v657_v48 }
 0x32e   :  { %v1091_v51 = vpop.eup %1090 }
 0x32f   :  { %969 = vpush %v1091_v51 }
 0x330   :  { %971 = vpush %v750_v52 }
 0x360   :  { %s970_s17 = spop %969 }
 0x361   :  { %v660_v53 = vstv %s970_s17  ;;  %s972_s18 = spop %971 }
 0x362   :  { %v661_v54 = vmul.f32 %v660_v53, %v621_v13  ;;  %v662_v56 = vmul.f32 %v660_v53, %v622_v14  ;;  %v663_v57 = vmul.f32 %v660_v53, %v623_v15  ;;  %v664_v59 = vmul.f32 %v660_v53, %v624_v16  ;;  %s754_s19 = smul.f32 0.00012207031, %s972_s18 }
 0x363   :  { %v665_v60 = vmul.f32 %v660_v53, %v625_v20  ;;  %v667_v61 = vmul.f32 %v660_v53, %v627_v28  ;;  %v668_v63 = vmul.f32 %v660_v53, %v628_v8  ;;  %v666_v6 = vmul.f32 %v660_v53, %v626_v25 }
 0x364   :  { %v953_v0 = vmul.f32 -1.442695, %v661_v54  ;;  %v954_v1 = vmul.f32 -1.442695, %v662_v56  ;;  %v955_v3 = vmul.f32 -1.442695, %v663_v57  ;;  %v755_v4 = vstv %s754_s19 }
 0x365   :  { %v956_v5 = vmul.f32 -1.442695, %v664_v59  ;;  %1092 = vtanh.f32 %v665_v60  ;;  %v1424_v7 = vsub.f32 %v1393_v39, %v755_v4  ;;  %v1427_v9 = vsub.f32 %v1395_v42, %v755_v4 }
 0x366   :  { %1094 = vpow2.f32 %v953_v0  ;;  %v957_v11 = vmul.f32 -1.442695, %v667_v61  ;;  %v1430_v13 = vsub.f32 %v1397_v44, %v755_v4  ;;  %v958_v14 = vmul.f32 -1.442695, %v668_v63 }
 0x367   :  { %1096 = vpow2.f32 %v954_v1  ;;  %v764_v15 = vmul.f32 %v1424_v7, %v1424_v7  ;;  %v1435_v16 = vsub.f32 %v1401_v47, %v755_v4  ;;  %v765_v39 = vmul.f32 %v1427_v9, %v1427_v9 }
 0x368   :  { %1098 = vpow2.f32 %v955_v3  ;;  %v1440_v42 = vsub.f32 %v1405_v55, %v755_v4  ;;  %v766_v44 = vmul.f32 %v1430_v13, %v1430_v13  ;;  %v1445_v19 = vsub.f32 %v1407_v58, %v755_v4 }
 0x369   :  { %1100 = vpow2.f32 %v956_v5  ;;  %v772_v18 = vadd.f32 %v765_v39, %v764_v15  ;;  %v767_v47 = vmul.f32 %v1435_v16, %v1435_v16  ;;  %v1450_v23 = vsub.f32 %v1410_v62, %v755_v4 }
 0x36a   :  { %1102 = vtanh.f32 %v666_v6  ;;  %v768_v55 = vmul.f32 %v1440_v42, %v1440_v42  ;;  %v1455_v29 = vsub.f32 %v1413_v2, %v755_v4  ;;  %v769_v58 = vmul.f32 %v1445_v19, %v1445_v19 }
 0x36b   :  { %1104 = vpow2.f32 %v957_v11  ;;  %v773_v20 = vadd.f32 %v772_v18, %v766_v44  ;;  %v770_v34 = vmul.f32 %v1450_v23, %v1450_v23 }
 0x36c   :  { %1106 = vpow2.f32 %v958_v14  ;;  %v771_v2 = vmul.f32 %v1455_v29, %v1455_v29 }
 0x36d   :  { %v774_v25 = vadd.f32 %v773_v20, %v767_v47 }
 0x36f   :  { %v1093_v21 = vpop.eup %1092  ;;  %v775_v30 = vadd.f32 %v774_v25, %v768_v55 }
 0x370   :  { %v1095_v26 = vpop.eup %1094  ;;  %731 = vst [vmem:[#allocation10 + $0x80] sm:$0xff] %v1093_v21 }
 0x371   :  { %v1097_v27 = vpop.eup %1096  ;;  %v675_v28 = vadd.f32 1.0, %v1095_v26  ;;  %v776_v12 = vadd.f32 %v775_v30, %v769_v58 }
 0x372   :  { %v1099_v8 = vpop.eup %1098  ;;  %v676_v33 = vadd.f32 1.0, %v1097_v27 }
 0x373   :  { %v1101_v10 = vpop.eup %1100  ;;  %1108 = vrcp.f32 %v675_v28  ;;  %v687_v62 = vadd.f32 1.0, %v1099_v8  ;;  %v777_v37 = vadd.f32 %v776_v12, %v770_v34 }
 0x374   :  { %v1103_v35 = vpop.eup %1102  ;;  %1110 = vrcp.f32 %v676_v33  ;;  %v688_v17 = vadd.f32 1.0, %v1101_v10 }
 0x375   :  { %v1105_v36 = vpop.eup %1104  ;;  %1112 = vrcp.f32 %v687_v62  ;;  %732 = vst [vmem:[#allocation10 + $0x88] sm:$0xff] %v1103_v35  ;;  %v778_v41 = vadd.f32 %v777_v37, %v771_v2  ;;  %v843_v37 = vld [vmem:[#allocation8 + $0x18] sm:$0xff] }
 0x376   :  { %v1107_v22 = vpop.eup %1106  ;;  %1114 = vrcp.f32 %v688_v17  ;;  %v701_v38 = vadd.f32 1.0, %v1105_v36  ;;  %v842_v36 = vld [vmem:[#allocation8 + $0x10] sm:$0xff] }
 0x377   :  { %v702_v40 = vadd.f32 1.0, %v1107_v22  ;;  %779 = vadd.xlane.f32.xlu1 %v778_v41 }
 0x378   :  { %1116 = vrcp.f32 %v701_v38 }
 0x379   :  { %1118 = vrcp.f32 %v702_v40 }
 0x37d   :  { %v1109_v24 = vpop.eup %1108 }
 0x37e   :  { %v1111_v31 = vpop.eup %1110  ;;  %v711_v46 = vmul.f32 %v1109_v24, %v1093_v21  ;;  %725 = vst [vmem:[#allocation10 + $0x40] sm:$0xff] %v1109_v24 }
 0x37f   :  { %v1113_v32 = vpop.eup %1112  ;;  %v712_v48 = vmul.f32 %v1111_v31, %v1103_v35  ;;  %726 = vst [vmem:[#allocation10 + $0x48] sm:$0xff] %v1111_v31 }
 0x380   :  { %v1115_v49 = vpop.eup %1114  ;;  %v709_v50 = vmul.f32 %v1113_v32, %v707_v43  ;;  %728 = vst [vmem:[#allocation10 + $0x60] sm:$0xff] %v1113_v32 }
 0x381   :  { %v710_v51 = vmul.f32 %v1115_v49, %v708_v45  ;;  %729 = vst [vmem:[#allocation10 + $0x68] sm:$0xff] %v1115_v49 }
 0x382   :  { %v1117_v52 = vpop.eup %1116  ;;  %v713_v53 = vadd.f32 %v711_v46, %v709_v50 }
 0x383   :  { %v1119_v54 = vpop.eup %1118  ;;  %v714_v56 = vadd.f32 %v712_v48, %v710_v51  ;;  %734 = vst [vmem:[#allocation10 + $0xa0] sm:$0xff] %v1117_v52 }
 0x384   :  { %1120 = vtanh.f32 %v713_v53  ;;  %722 = vst [vmem:[#allocation10 + $0x20] sm:$0xff] %v713_v53  ;;  %735 = vst [vmem:[#allocation10 + $0xa8] sm:$0xff] %v1119_v54 }
 0x385   :  { %1122 = vtanh.f32 %v714_v56  ;;  %723 = vst [vmem:[#allocation10 + $0x28] sm:$0xff] %v714_v56 }
 0x38e   :  { %v1121_v57 = vpop.eup %1120 }
 0x38f   :  { %v1123_v59 = vpop.eup %1122  ;;  %v717_v60 = vmul.f32 %v1121_v57, %v1117_v52 }
 0x390   :  { %v718_v61 = vmul.f32 %v1123_v59, %v1119_v54 }
 0x391   :  { %719 = vst [vmem:[#allocation10] sm:$0xff] %v717_v60 }
 0x392   :  { %720 = vst [vmem:[#allocation10 + $0x8] sm:$0xff] %v718_v61 }
 0x404   :  { %v780_v63 = vpop.xlane.xlu1 %779 }
 0x405   :  { %v781_v0 = vrot.slane %v780_v63, 4 }
 0x407   :  { %v782_v1 = vadd.f32 %v781_v0, %v780_v63 }
 0x409   :  { %v783_v3 = vrot.slane %v782_v1, 2 }
 0x40b   :  { %v784_v4 = vadd.f32 %v783_v3, %v782_v1 }
 0x40d   :  { %v785_v5 = vrot.slane %v784_v4, 1 }
 0x40f   :  { %v786_v6 = vadd.f32 %v785_v5, %v784_v4 }
 0x411   :  { %973 = vpush %v786_v6 }
 0x442   :  { %s974_s20 = spop %973 }
 0x443   :  { %s790_s21 = smul.f32 0.00012207031, %s974_s20 }
 0x445   :  { %s791_s22 = sadd.f32 1e-05, %s790_s21 }
 0x447   :  { %v792_v11 = vstv %s791_s22 }
 0x448   :  { %1124 = vrsqrt.f32 %v792_v11 }
 0x452   :  { %v1125_v14 = vpop.eup %1124 }
 0x453   :  { %975 = vpush %v1125_v14 }
 0x484   :  { %s976_s23 = spop %975 }
 0x485   :  { %v795_v15 = vstv %s976_s23 }
 0x486   :  { %v796_v39 = vmul.f32 %v795_v15, %v1424_v7  ;;  %v797_v44 = vmul.f32 %v795_v15, %v1427_v9  ;;  %v798_v18 = vmul.f32 %v795_v15, %v1430_v13  ;;  %v799_v47 = vmul.f32 %v795_v15, %v1435_v16 }
 0x487   :  { %v800_v20 = vmul.f32 %v795_v15, %v1440_v42  ;;  %v802_v21 = vmul.f32 %v795_v15, %v1450_v23  ;;  %v803_v55 = vmul.f32 %v795_v15, %v1455_v29  ;;  %v801_v58 = vmul.f32 %v795_v15, %v1445_v19 }
 0x488   :  { %v959_v25 = vmul.f32 -1.442695, %v796_v39  ;;  %v960_v26 = vmul.f32 -1.442695, %v797_v44  ;;  %v961_v27 = vmul.f32 -1.442695, %v798_v18 }
 0x489   :  { %v962_v28 = vmul.f32 -1.442695, %v799_v47  ;;  %1126 = vtanh.f32 %v800_v20  ;;  %v963_v7 = vmul.f32 -1.442695, %v802_v21  ;;  %v964_v9 = vmul.f32 -1.442695, %v803_v55 }
 0x48a   :  { %1128 = vpow2.f32 %v959_v25 }
 0x48b   :  { %1130 = vpow2.f32 %v960_v26 }
 0x48c   :  { %1132 = vpow2.f32 %v961_v27 }
 0x48d   :  { %1134 = vpow2.f32 %v962_v28 }
 0x48e   :  { %1136 = vtanh.f32 %v801_v58 }
 0x48f   :  { %1138 = vpow2.f32 %v963_v7 }
 0x490   :  { %1140 = vpow2.f32 %v964_v9 }
 0x493   :  { %v1127_v13 = vpop.eup %1126 }
 0x494   :  { %v1129_v16 = vpop.eup %1128  ;;  %862 = vst [vmem:[#allocation10 + $0x90] sm:$0xff] %v1127_v13 }
 0x495   :  { %v1131_v42 = vpop.eup %1130  ;;  %v810_v23 = vadd.f32 1.0, %v1129_v16 }
 0x496   :  { %v1133_v29 = vpop.eup %1132  ;;  %v811_v30 = vadd.f32 1.0, %v1131_v42 }
 0x497   :  { %v1135_v8 = vpop.eup %1134  ;;  %1142 = vrcp.f32 %v810_v23  ;;  %v822_v33 = vadd.f32 1.0, %v1133_v29 }
 0x498   :  { %v1137_v19 = vpop.eup %1136  ;;  %1144 = vrcp.f32 %v811_v30  ;;  %v823_v10 = vadd.f32 1.0, %v1135_v8 }
 0x499   :  { %v1139_v62 = vpop.eup %1138  ;;  %1146 = vrcp.f32 %v822_v33  ;;  %863 = vst [vmem:[#allocation10 + $0x98] sm:$0xff] %v1137_v19 }
 0x49a   :  { %v1141_v34 = vpop.eup %1140  ;;  %1148 = vrcp.f32 %v823_v10  ;;  %v836_v12 = vadd.f32 1.0, %v1139_v62 }
 0x49b   :  { %v837_v35 = vadd.f32 1.0, %v1141_v34 }
 0x49c   :  { %1150 = vrcp.f32 %v836_v12 }
 0x49d   :  { %1152 = vrcp.f32 %v837_v35 }
 0x4a1   :  { %v1143_v17 = vpop.eup %1142 }
 0x4a2   :  { %v1145_v2 = vpop.eup %1144  ;;  %v846_v22 = vmul.f32 %v1143_v17, %v1127_v13  ;;  %858 = vst [vmem:[#allocation10 + $0x50] sm:$0xff] %v1143_v17 }
 0x4a3   :  { %v1147_v38 = vpop.eup %1146  ;;  %v847_v40 = vmul.f32 %v1145_v2, %v1137_v19  ;;  %859 = vst [vmem:[#allocation10 + $0x58] sm:$0xff] %v1145_v2 }
 0x4a4   :  { %v1149_v41 = vpop.eup %1148  ;;  %v844_v24 = vmul.f32 %v1147_v38, %v842_v36  ;;  %860 = vst [vmem:[#allocation10 + $0x70] sm:$0xff] %v1147_v38 }
 0x4a5   :  { %v845_v43 = vmul.f32 %v1149_v41, %v843_v37  ;;  %861 = vst [vmem:[#allocation10 + $0x78] sm:$0xff] %v1149_v41 }
 0x4a6   :  { %v1151_v31 = vpop.eup %1150  ;;  %v848_v45 = vadd.f32 %v846_v22, %v844_v24 }
 0x4a7   :  { %v1153_v46 = vpop.eup %1152  ;;  %v849_v32 = vadd.f32 %v847_v40, %v845_v43  ;;  %864 = vst [vmem:[#allocation10 + $0xb0] sm:$0xff] %v1151_v31 }
 0x4a8   :  { %1154 = vtanh.f32 %v848_v45  ;;  %856 = vst [vmem:[#allocation10 + $0x30] sm:$0xff] %v848_v45  ;;  %865 = vst [vmem:[#allocation10 + $0xb8] sm:$0xff] %v1153_v46 }
 0x4a9   :  { %1156 = vtanh.f32 %v849_v32  ;;  %857 = vst [vmem:[#allocation10 + $0x38] sm:$0xff] %v849_v32 }
 0x4b2   :  { %v1155_v48 = vpop.eup %1154 }
 0x4b3   :  { %v1157_v49 = vpop.eup %1156  ;;  %v852_v50 = vmul.f32 %v1155_v48, %v1151_v31 }
 0x4b4   :  { %v853_v51 = vmul.f32 %v1157_v49, %v1153_v46 }
 0x4b5   :  { %854 = vst [vmem:[#allocation10 + $0x10] sm:$0xff] %v852_v50 }
 0x4b6   :  { %855 = vst [vmem:[#allocation10 + $0x18] sm:$0xff] %v853_v51 }
 0x4b7   :  { %1257 = shalt.err (!%p1254_p8)
}
 0x4b8   :  { %s1258_s30 = scalar_lea.hbm %s1490_s4, 3072 }
 0x4b9   :  { %p1259_p9 = scmp.ne.s32.totalorder %s1490_s4, %s1258_s30  ;;  %p1262_p10 = scmp.lt.u32.totalorder %s1258_s30, %s1490_s4 }
 0x4bb   :  { %p1264_p11 = pnand %p1262_p10, %p1259_p9 }
 0x4bd   :  { %1267 = shalt.err (!%p1264_p11)
}
 0x4be   :  { %877 = dma.vmem_to_hbm [thread:$0]  %s872_s25, 3072, %s1490_s4, [#allocation4], %s1283_s0, %s1283_s0, %s1284_s26  }
 0x4bf   :  { %1274 = dma.done.wait [#allocation4], 3072  }
 0x4c0   :  { %1275 = vsyncadd [#allocation4], 4294964224 }
 0x4c1   :  { %881 = vsyncpa [#allocation3], 1 }
 0x4c2   :  { %882 = vsyncpa [#allocation6], 1 }
 0x4c3   :  { %883 = vsyncpa [#allocation9], 1 }
 0x4c4   :  { %884 = vsyncpa [#allocation4], 1 }

</bundles_post_ra>
